<compile_context>
chip_gen: v5e
topology: v5e:2x2
jax: 0.10.0
libtpu: 0.0.40
codegen_flags: <defaults>
</compile_context>

<pallas_src>
import jax
import jax.numpy as jnp
from jax.experimental import pallas as pl
from jax.experimental.pallas import tpu as pltpu

# Small, module-consistent shapes
B, S, H = 2, 8, 32          # batch, seq, hidden_size
HEADS, DH = 2, 16           # attention heads, head dim
FF = 64                     # FFN intermediate
V = 100                     # vocab size
L = 3                       # num_labels


def _layernorm(x, g, b, eps=1e-12):
    mu = jnp.mean(x, axis=-1, keepdims=True)
    var = jnp.mean((x - mu) ** 2, axis=-1, keepdims=True)
    return (x - mu) * jax.lax.rsqrt(var + eps) * g + b


# ----------------------------------------------------------------------------
# One fused Pallas kernel: emb-LN + encoder layer + CLS pick + classifier
# ----------------------------------------------------------------------------
def fused_forward_kernel(x_ref, mask_ref, wqkv_ref, bqkv_ref, wo_ref,
                         w1_ref, b1_ref, w2_ref, hv_ref, wcls_ref, bcls_ref,
                         logits_ref):
    # packed H-wide parameter slab: rows are
    # [emb_ln_g, emb_ln_b, bo, ln1g, ln1b, b2, ln2g, ln2b]
    hv = hv_ref[...]
    emb_g, emb_b = hv[0:1, :], hv[1:2, :]
    bo, ln1g, ln1b = hv[2:3, :], hv[3:4, :], hv[4:5, :]
    b2, ln2g, ln2b = hv[5:6, :], hv[6:7, :], hv[7:8, :]

    # embedding layernorm, whole batch as (B*S, H)
    x = _layernorm(x_ref[...].reshape(B * S, H), emb_g, emb_b)

    # fused QKV projection: one (B*S, H) @ (H, 3H) MXU pass
    qkv = jnp.dot(x, wqkv_ref[...], preferred_element_type=jnp.float32) + bqkv_ref[...]

    # additive attention mask (0 / -1e9), broadcast over query positions
    mask_add = ((1.0 - mask_ref[...]) * -1e9)[:, None, :]     # (B, 1, S)

    scale = float(DH) ** -0.5
    wo = wo_ref[...]
    attn = jnp.zeros((B * S, H), jnp.float32)
    for h in range(HEADS):                                    # static, tiny head count
        qs = slice(h * DH, (h + 1) * DH)
        ks = slice(H + h * DH, H + (h + 1) * DH)
        vs = slice(2 * H + h * DH, 2 * H + (h + 1) * DH)
        qh = qkv[:, qs].reshape(B, S, DH)
        kh = qkv[:, ks].reshape(B, S, DH)
        vh = qkv[:, vs].reshape(B, S, DH)
        # contraction on the head dim -> no explicit kh.T (no XLU transpose)
        s = jnp.einsum('bqd,bkd->bqk', qh, kh,
                       preferred_element_type=jnp.float32) * scale + mask_add
        m = jnp.max(s, axis=-1, keepdims=True)
        p = jnp.exp(s - m)
        p = p * pl.reciprocal(jnp.sum(p, axis=-1, keepdims=True), approx=True)
        ctx = jnp.einsum('bqk,bkd->bqd', p, vh,
                         preferred_element_type=jnp.float32).reshape(B * S, DH)
        # per-head slice of the output projection; summing replaces a lane concat
        attn = attn + jnp.dot(ctx, wo[qs, :], preferred_element_type=jnp.float32)
    attn = attn + bo

    h1 = _layernorm(x + attn, ln1g, ln1b)
    ff = jax.nn.gelu(jnp.dot(h1, w1_ref[...],
                             preferred_element_type=jnp.float32) + b1_ref[...])
    ff = jnp.dot(ff, w2_ref[...], preferred_element_type=jnp.float32) + b2
    h2 = _layernorm(h1 + ff, ln2g, ln2b)

    # CLS token -> dropout(0.3) is identity at inference -> classifier head
    cls = h2.reshape(B, S, H)[:, 0, :]                        # (B, H)
    logits_ref[...] = (jnp.dot(cls, wcls_ref[...],
                               preferred_element_type=jnp.float32) + bcls_ref[...])


def fused_forward(x_emb, mask_f, p):
    # No grid: single kernel invocation, every operand fully resident in VMEM
    # (total footprint << 1 MiB), so there is no per-step pipeline overhead
    # and no index_map lambdas to maintain.
    vmem = pl.BlockSpec(memory_space=pltpu.MemorySpace.VMEM)
    return pl.pallas_call(
        fused_forward_kernel,
        out_shape=jax.ShapeDtypeStruct((B, L), jnp.float32),
        in_specs=[vmem] * 11,
        out_specs=vmem,
    )(x_emb, mask_f, p["w_qkv"], p["b_qkv"], p["w_o"],
      p["w_ff1"], p["b_ff1"], p["w_ff2"], p["hvecs"], p["w_cls"], p["b_cls"])


# ----------------------------------------------------------------------------
# Full forward (inference: dropout(0.3) is identity)
# ----------------------------------------------------------------------------
def bias_classifier_forward(packed, input_ids, attention_mask):
    # embedding gather is the only plain-JAX glue; LN/mask are fused in-kernel
    x_emb = packed["tok_emb"][input_ids] + packed["pos_emb"][None, :, :]
    mask_f = attention_mask.astype(jnp.float32)
    logits = fused_forward(x_emb, mask_f, packed)
    # TODO(synk): labels / CrossEntropyLoss branch not implemented (inference path only)
    return logits


def init_params(key):
    ks = jax.random.split(key, 12)
    n = lambda k, s: jax.random.normal(k, s, jnp.float32) * 0.02
    return {
        "tok_emb": n(ks[0], (V, H)),
        "pos_emb": n(ks[1], (S, H)),
        "emb_ln_g": jnp.ones((H,), jnp.float32),
        "emb_ln_b": jnp.zeros((H,), jnp.float32),
        "wq": n(ks[2], (H, H)), "bq": jnp.zeros((1, H), jnp.float32),
        "wk": n(ks[3], (H, H)), "bk": jnp.zeros((1, H), jnp.float32),
        "wv": n(ks[4], (H, H)), "bv": jnp.zeros((1, H), jnp.float32),
        "wo": n(ks[5], (H, H)), "bo": jnp.zeros((1, H), jnp.float32),
        "ln1g": jnp.ones((1, H), jnp.float32), "ln1b": jnp.zeros((1, H), jnp.float32),
        "w1": n(ks[6], (H, FF)), "b1": jnp.zeros((1, FF), jnp.float32),
        "w2": n(ks[7], (FF, H)), "b2": jnp.zeros((1, H), jnp.float32),
        "ln2g": jnp.ones((1, H), jnp.float32), "ln2b": jnp.zeros((1, H), jnp.float32),
        "w_cls": n(ks[8], (H, L)), "b_cls": jnp.zeros((1, L), jnp.float32),
    }


def pack_params(p):
    """Pack the 20 tiny parameter tensors into 9 kernel inputs (fewer DMAs)."""
    return {
        "tok_emb": p["tok_emb"],
        "pos_emb": p["pos_emb"],
        "w_qkv": jnp.concatenate([p["wq"], p["wk"], p["wv"]], axis=1),     # (H, 3H)
        "b_qkv": jnp.concatenate([p["bq"], p["bk"], p["bv"]], axis=1),     # (1, 3H)
        "w_o": p["wo"],
        "w_ff1": p["w1"], "b_ff1": p["b1"],
        "w_ff2": p["w2"],
        "hvecs": jnp.concatenate(
            [p["emb_ln_g"][None, :], p["emb_ln_b"][None, :],
             p["bo"], p["ln1g"], p["ln1b"],
             p["b2"], p["ln2g"], p["ln2b"]], axis=0),                      # (8, H)
        "w_cls": p["w_cls"], "b_cls": p["b_cls"],
    }


# Pure-JAX reference (same math, unpacked params) for a sanity check
def _reference(params, input_ids, attention_mask):
    x = params["tok_emb"][input_ids] + params["pos_emb"][None, :, :]
    x = _layernorm(x, params["emb_ln_g"][None, None, :], params["emb_ln_b"][None, None, :])
    mask_add = ((1.0 - attention_mask.astype(jnp.float32)) * -1e9)[:, None, :]
    q = x @ params["wq"] + params["bq"]
    k = x @ params["wk"] + params["bk"]
    v = x @ params["wv"] + params["bv"]
    qh = q.reshape(B, S, HEADS, DH).transpose(0, 2, 1, 3)
    kh = k.reshape(B, S, HEADS, DH).transpose(0, 2, 1, 3)
    vh = v.reshape(B, S, HEADS, DH).transpose(0, 2, 1, 3)
    scores = jnp.einsum("bhqd,bhkd->bhqk", qh, kh) / jnp.sqrt(jnp.float32(DH))
    scores = scores + mask_add[:, :, None, :]
    p = jax.nn.softmax(scores, axis=-1)
    ctx = jnp.einsum("bhqk,bhkd->bhqd", p, vh).transpose(0, 2, 1, 3).reshape(B, S, H)
    attn = ctx @ params["wo"] + params["bo"]
    h1 = _layernorm(x + attn, params["ln1g"], params["ln1b"])
    ff = jax.nn.gelu(h1 @ params["w1"] + params["b1"]) @ params["w2"] + params["b2"]
    x = _layernorm(h1 + ff, params["ln2g"], params["ln2b"])
    return x[:, 0, :] @ params["w_cls"] + params["b_cls"]


if __name__ == "__main__":
    key = jax.random.PRNGKey(0)
    k_param, k_ids = jax.random.split(key)
    params = init_params(k_param)
    packed = pack_params(params)

    input_ids = jax.random.randint(k_ids, (B, S), 0, V, dtype=jnp.int32)
    attention_mask = jnp.array([[1, 1, 1, 1, 1, 1, 1, 1],
                                [1, 1, 1, 1, 1, 0, 0, 0]], dtype=jnp.int32)

    logits = jax.jit(bias_classifier_forward)(packed, input_ids, attention_mask)
    logits = jax.block_until_ready(logits)

    ref = _reference(params, input_ids, attention_mask)
    assert logits.shape == (B, L)
    assert bool(jnp.all(jnp.isfinite(logits)))
    # approx reciprocal in the in-kernel softmax -> allow a slightly looser tol
    assert bool(jnp.allclose(logits, ref, atol=1e-3, rtol=1e-3))
    print("KERNEL_OK")
</pallas_src>

<mosaic_0001>
module attributes {stable_mosaic.version = 11 : i64} {
  func.func @fused_forward_kernel(%arg0: memref<2x8x32xf32, #tpu.memory_space<vmem>>, %arg1: memref<2x8xf32, #tpu.memory_space<vmem>>, %arg2: memref<32x96xf32, #tpu.memory_space<vmem>>, %arg3: memref<1x96xf32, #tpu.memory_space<vmem>>, %arg4: memref<32x32xf32, #tpu.memory_space<vmem>>, %arg5: memref<32x64xf32, #tpu.memory_space<vmem>>, %arg6: memref<1x64xf32, #tpu.memory_space<vmem>>, %arg7: memref<64x32xf32, #tpu.memory_space<vmem>>, %arg8: memref<8x32xf32, #tpu.memory_space<vmem>>, %arg9: memref<32x3xf32, #tpu.memory_space<vmem>>, %arg10: memref<1x3xf32, #tpu.memory_space<vmem>>, %arg11: memref<2x3xf32, #tpu.memory_space<vmem>>) attributes {dimension_semantics = [], scalar_prefetch = 0 : i64, scratch_operands = 0 : i64, tpu.core_type = #tpu.core_type<tc>} {
    %c0 = arith.constant 0 : index
    %c0_0 = arith.constant 0 : index
    %0 = vector.load %arg8[%c0, %c0_0] : memref<8x32xf32, #tpu.memory_space<vmem>>, vector<8x32xf32>
    %1 = vector.extract_strided_slice %0 {offsets = [0, 0], sizes = [1, 32], strides = [1, 1]} : vector<8x32xf32> to vector<1x32xf32>
    %2 = vector.extract_strided_slice %0 {offsets = [1, 0], sizes = [1, 32], strides = [1, 1]} : vector<8x32xf32> to vector<1x32xf32>
    %3 = vector.extract_strided_slice %0 {offsets = [2, 0], sizes = [1, 32], strides = [1, 1]} : vector<8x32xf32> to vector<1x32xf32>
    %4 = vector.extract_strided_slice %0 {offsets = [3, 0], sizes = [1, 32], strides = [1, 1]} : vector<8x32xf32> to vector<1x32xf32>
    %5 = vector.extract_strided_slice %0 {offsets = [4, 0], sizes = [1, 32], strides = [1, 1]} : vector<8x32xf32> to vector<1x32xf32>
    %6 = vector.extract_strided_slice %0 {offsets = [5, 0], sizes = [1, 32], strides = [1, 1]} : vector<8x32xf32> to vector<1x32xf32>
    %7 = vector.extract_strided_slice %0 {offsets = [6, 0], sizes = [1, 32], strides = [1, 1]} : vector<8x32xf32> to vector<1x32xf32>
    %8 = vector.extract_strided_slice %0 {offsets = [7, 0], sizes = [1, 32], strides = [1, 1]} : vector<8x32xf32> to vector<1x32xf32>
    %c0_1 = arith.constant 0 : index
    %c0_2 = arith.constant 0 : index
    %c0_3 = arith.constant 0 : index
    %9 = vector.load %arg0[%c0_1, %c0_2, %c0_3] : memref<2x8x32xf32, #tpu.memory_space<vmem>>, vector<2x8x32xf32>
    %10 = vector.shape_cast %9 : vector<2x8x32xf32> to vector<16x32xf32>
    %cst = arith.constant dense<0.000000e+00> : vector<16xf32>
    %11 = vector.multi_reduction <add>, %10, %cst [1] : vector<16x32xf32> to vector<16xf32>
    %12 = vector.shape_cast %11 : vector<16xf32> to vector<16x1xf32>
    %cst_4 = arith.constant 3.200000e+01 : f32
    %13 = vector.broadcast %cst_4 : f32 to vector<16x1xf32>
    %14 = arith.divf %12, %13 : vector<16x1xf32>
    %15 = vector.broadcast %14 : vector<16x1xf32> to vector<16x32xf32>
    %16 = arith.subf %10, %15 : vector<16x32xf32>
    %17 = arith.mulf %16, %16 : vector<16x32xf32>
    %cst_5 = arith.constant dense<0.000000e+00> : vector<16xf32>
    %18 = vector.multi_reduction <add>, %17, %cst_5 [1] : vector<16x32xf32> to vector<16xf32>
    %19 = vector.shape_cast %18 : vector<16xf32> to vector<16x1xf32>
    %cst_6 = arith.constant 3.200000e+01 : f32
    %20 = vector.broadcast %cst_6 : f32 to vector<16x1xf32>
    %21 = arith.divf %19, %20 : vector<16x1xf32>
    %22 = vector.broadcast %14 : vector<16x1xf32> to vector<16x32xf32>
    %23 = arith.subf %10, %22 : vector<16x32xf32>
    %cst_7 = arith.constant 9.99999996E-13 : f32
    %24 = vector.broadcast %cst_7 : f32 to vector<16x1xf32>
    %25 = arith.addf %21, %24 : vector<16x1xf32>
    %26 = math.rsqrt %25 : vector<16x1xf32>
    %27 = vector.broadcast %26 : vector<16x1xf32> to vector<16x32xf32>
    %28 = arith.mulf %23, %27 : vector<16x32xf32>
    %29 = vector.broadcast %1 : vector<1x32xf32> to vector<16x32xf32>
    %30 = arith.mulf %28, %29 : vector<16x32xf32>
    %31 = vector.broadcast %2 : vector<1x32xf32> to vector<16x32xf32>
    %32 = arith.addf %30, %31 : vector<16x32xf32>
    %c0_8 = arith.constant 0 : index
    %c0_9 = arith.constant 0 : index
    %33 = vector.load %arg2[%c0_8, %c0_9] : memref<32x96xf32, #tpu.memory_space<vmem>>, vector<32x96xf32>
    %cst_10 = arith.constant dense<0.000000e+00> : vector<16x96xf32>
    %34 = tpu.matmul %32, %33, %cst_10 {dimension_numbers = #tpu.dot_dimension_numbers<[1], [0], [0], [1], [0, 0, 1, 1], [], []>} : vector<16x32xf32>, vector<32x96xf32>, vector<16x96xf32> -> vector<16x96xf32>
    %c0_11 = arith.constant 0 : index
    %c0_12 = arith.constant 0 : index
    %35 = vector.load %arg3[%c0_11, %c0_12] : memref<1x96xf32, #tpu.memory_space<vmem>>, vector<1x96xf32>
    %36 = vector.broadcast %35 : vector<1x96xf32> to vector<16x96xf32>
    %37 = arith.addf %34, %36 : vector<16x96xf32>
    %c0_13 = arith.constant 0 : index
    %c0_14 = arith.constant 0 : index
    %38 = vector.load %arg1[%c0_13, %c0_14] : memref<2x8xf32, #tpu.memory_space<vmem>>, vector<2x8xf32>
    %cst_15 = arith.constant 1.000000e+00 : f32
    %39 = vector.broadcast %cst_15 : f32 to vector<2x8xf32>
    %40 = arith.subf %39, %38 : vector<2x8xf32>
    %cst_16 = arith.constant -1.000000e+09 : f32
    %41 = vector.broadcast %cst_16 : f32 to vector<2x8xf32>
    %42 = arith.mulf %40, %41 : vector<2x8xf32>
    %43 = vector.shape_cast %42 : vector<2x8xf32> to vector<2x1x8xf32>
    %c0_17 = arith.constant 0 : index
    %c0_18 = arith.constant 0 : index
    %44 = vector.load %arg4[%c0_17, %c0_18] : memref<32x32xf32, #tpu.memory_space<vmem>>, vector<32x32xf32>
    %cst_19 = arith.constant 0.000000e+00 : f32
    %45 = vector.broadcast %cst_19 : f32 to vector<16x32xf32>
    %46 = vector.extract_strided_slice %37 {offsets = [0, 0], sizes = [16, 16], strides = [1, 1]} : vector<16x96xf32> to vector<16x16xf32>
    %47 = vector.shape_cast %46 : vector<16x16xf32> to vector<2x8x16xf32>
    %48 = vector.extract_strided_slice %37 {offsets = [0, 32], sizes = [16, 16], strides = [1, 1]} : vector<16x96xf32> to vector<16x16xf32>
    %49 = vector.shape_cast %48 : vector<16x16xf32> to vector<2x8x16xf32>
    %50 = vector.extract_strided_slice %37 {offsets = [0, 64], sizes = [16, 16], strides = [1, 1]} : vector<16x96xf32> to vector<16x16xf32>
    %51 = vector.shape_cast %50 : vector<16x16xf32> to vector<2x8x16xf32>
    "tpu.trace_start"() <{level = 10 : i32, message = "bqd,bkd->bqk"}> : () -> ()
    %cst_20 = arith.constant dense<0.000000e+00> : vector<2x8x8xf32>
    %52 = tpu.matmul %47, %49, %cst_20 {dimension_numbers = #tpu.dot_dimension_numbers<[2], [2], [1], [1], [0, 0, 0, 1, 1, 1], [0], [0]>} : vector<2x8x16xf32>, vector<2x8x16xf32>, vector<2x8x8xf32> -> vector<2x8x8xf32>
    "tpu.trace_stop"() : () -> ()
    %cst_21 = arith.constant 2.500000e-01 : f32
    %53 = vector.broadcast %cst_21 : f32 to vector<2x8x8xf32>
    %54 = arith.mulf %52, %53 : vector<2x8x8xf32>
    %55 = vector.broadcast %43 : vector<2x1x8xf32> to vector<2x8x8xf32>
    %56 = arith.addf %54, %55 : vector<2x8x8xf32>
    %cst_22 = arith.constant dense<0xFF800000> : vector<2x8xf32>
    %57 = vector.multi_reduction <maximumf>, %56, %cst_22 [2] : vector<2x8x8xf32> to vector<2x8xf32>
    %58 = vector.shape_cast %57 : vector<2x8xf32> to vector<2x8x1xf32>
    %59 = vector.broadcast %58 : vector<2x8x1xf32> to vector<2x8x8xf32>
    %60 = arith.subf %56, %59 : vector<2x8x8xf32>
    %61 = math.exp %60 : vector<2x8x8xf32>
    %cst_23 = arith.constant dense<0.000000e+00> : vector<2x8xf32>
    %62 = vector.multi_reduction <add>, %61, %cst_23 [2] : vector<2x8x8xf32> to vector<2x8xf32>
    %63 = vector.shape_cast %62 : vector<2x8xf32> to vector<2x8x1xf32>
    %64 = tpu.reciprocal %63 {approx = true} : vector<2x8x1xf32> -> vector<2x8x1xf32>
    %65 = vector.broadcast %64 : vector<2x8x1xf32> to vector<2x8x8xf32>
    %66 = arith.mulf %61, %65 : vector<2x8x8xf32>
    "tpu.trace_start"() <{level = 10 : i32, message = "bqk,bkd->bqd"}> : () -> ()
    %cst_24 = arith.constant dense<0.000000e+00> : vector<2x8x16xf32>
    %67 = tpu.matmul %66, %51, %cst_24 {dimension_numbers = #tpu.dot_dimension_numbers<[2], [1], [1], [2], [0, 0, 0, 1, 1, 2], [0], [0]>} : vector<2x8x8xf32>, vector<2x8x16xf32>, vector<2x8x16xf32> -> vector<2x8x16xf32>
    "tpu.trace_stop"() : () -> ()
    %68 = vector.shape_cast %67 : vector<2x8x16xf32> to vector<16x16xf32>
    %69 = vector.extract_strided_slice %44 {offsets = [0, 0], sizes = [16, 32], strides = [1, 1]} : vector<32x32xf32> to vector<16x32xf32>
    %cst_25 = arith.constant dense<0.000000e+00> : vector<16x32xf32>
    %70 = tpu.matmul %68, %69, %cst_25 {dimension_numbers = #tpu.dot_dimension_numbers<[1], [0], [0], [1], [0, 0, 1, 1], [], []>} : vector<16x16xf32>, vector<16x32xf32>, vector<16x32xf32> -> vector<16x32xf32>
    %71 = arith.addf %45, %70 : vector<16x32xf32>
    %72 = vector.extract_strided_slice %37 {offsets = [0, 16], sizes = [16, 16], strides = [1, 1]} : vector<16x96xf32> to vector<16x16xf32>
    %73 = vector.shape_cast %72 : vector<16x16xf32> to vector<2x8x16xf32>
    %74 = vector.extract_strided_slice %37 {offsets = [0, 48], sizes = [16, 16], strides = [1, 1]} : vector<16x96xf32> to vector<16x16xf32>
    %75 = vector.shape_cast %74 : vector<16x16xf32> to vector<2x8x16xf32>
    %76 = vector.extract_strided_slice %37 {offsets = [0, 80], sizes = [16, 16], strides = [1, 1]} : vector<16x96xf32> to vector<16x16xf32>
    %77 = vector.shape_cast %76 : vector<16x16xf32> to vector<2x8x16xf32>
    "tpu.trace_start"() <{level = 10 : i32, message = "bqd,bkd->bqk"}> : () -> ()
    %cst_26 = arith.constant dense<0.000000e+00> : vector<2x8x8xf32>
    %78 = tpu.matmul %73, %75, %cst_26 {dimension_numbers = #tpu.dot_dimension_numbers<[2], [2], [1], [1], [0, 0, 0, 1, 1, 1], [0], [0]>} : vector<2x8x16xf32>, vector<2x8x16xf32>, vector<2x8x8xf32> -> vector<2x8x8xf32>
    "tpu.trace_stop"() : () -> ()
    %cst_27 = arith.constant 2.500000e-01 : f32
    %79 = vector.broadcast %cst_27 : f32 to vector<2x8x8xf32>
    %80 = arith.mulf %78, %79 : vector<2x8x8xf32>
    %81 = vector.broadcast %43 : vector<2x1x8xf32> to vector<2x8x8xf32>
    %82 = arith.addf %80, %81 : vector<2x8x8xf32>
    %cst_28 = arith.constant dense<0xFF800000> : vector<2x8xf32>
    %83 = vector.multi_reduction <maximumf>, %82, %cst_28 [2] : vector<2x8x8xf32> to vector<2x8xf32>
    %84 = vector.shape_cast %83 : vector<2x8xf32> to vector<2x8x1xf32>
    %85 = vector.broadcast %84 : vector<2x8x1xf32> to vector<2x8x8xf32>
    %86 = arith.subf %82, %85 : vector<2x8x8xf32>
    %87 = math.exp %86 : vector<2x8x8xf32>
    %cst_29 = arith.constant dense<0.000000e+00> : vector<2x8xf32>
    %88 = vector.multi_reduction <add>, %87, %cst_29 [2] : vector<2x8x8xf32> to vector<2x8xf32>
    %89 = vector.shape_cast %88 : vector<2x8xf32> to vector<2x8x1xf32>
    %90 = tpu.reciprocal %89 {approx = true} : vector<2x8x1xf32> -> vector<2x8x1xf32>
    %91 = vector.broadcast %90 : vector<2x8x1xf32> to vector<2x8x8xf32>
    %92 = arith.mulf %87, %91 : vector<2x8x8xf32>
    "tpu.trace_start"() <{level = 10 : i32, message = "bqk,bkd->bqd"}> : () -> ()
    %cst_30 = arith.constant dense<0.000000e+00> : vector<2x8x16xf32>
    %93 = tpu.matmul %92, %77, %cst_30 {dimension_numbers = #tpu.dot_dimension_numbers<[2], [1], [1], [2], [0, 0, 0, 1, 1, 2], [0], [0]>} : vector<2x8x8xf32>, vector<2x8x16xf32>, vector<2x8x16xf32> -> vector<2x8x16xf32>
    "tpu.trace_stop"() : () -> ()
    %94 = vector.shape_cast %93 : vector<2x8x16xf32> to vector<16x16xf32>
    %95 = vector.extract_strided_slice %44 {offsets = [16, 0], sizes = [16, 32], strides = [1, 1]} : vector<32x32xf32> to vector<16x32xf32>
    %cst_31 = arith.constant dense<0.000000e+00> : vector<16x32xf32>
    %96 = tpu.matmul %94, %95, %cst_31 {dimension_numbers = #tpu.dot_dimension_numbers<[1], [0], [0], [1], [0, 0, 1, 1], [], []>} : vector<16x16xf32>, vector<16x32xf32>, vector<16x32xf32> -> vector<16x32xf32>
    %97 = arith.addf %71, %96 : vector<16x32xf32>
    %98 = vector.broadcast %3 : vector<1x32xf32> to vector<16x32xf32>
    %99 = arith.addf %97, %98 : vector<16x32xf32>
    %100 = arith.addf %32, %99 : vector<16x32xf32>
    %cst_32 = arith.constant dense<0.000000e+00> : vector<16xf32>
    %101 = vector.multi_reduction <add>, %100, %cst_32 [1] : vector<16x32xf32> to vector<16xf32>
    %102 = vector.shape_cast %101 : vector<16xf32> to vector<16x1xf32>
    %cst_33 = arith.constant 3.200000e+01 : f32
    %103 = vector.broadcast %cst_33 : f32 to vector<16x1xf32>
    %104 = arith.divf %102, %103 : vector<16x1xf32>
    %105 = vector.broadcast %104 : vector<16x1xf32> to vector<16x32xf32>
    %106 = arith.subf %100, %105 : vector<16x32xf32>
    %107 = arith.mulf %106, %106 : vector<16x32xf32>
    %cst_34 = arith.constant dense<0.000000e+00> : vector<16xf32>
    %108 = vector.multi_reduction <add>, %107, %cst_34 [1] : vector<16x32xf32> to vector<16xf32>
    %109 = vector.shape_cast %108 : vector<16xf32> to vector<16x1xf32>
    %cst_35 = arith.constant 3.200000e+01 : f32
    %110 = vector.broadcast %cst_35 : f32 to vector<16x1xf32>
    %111 = arith.divf %109, %110 : vector<16x1xf32>
    %112 = vector.broadcast %104 : vector<16x1xf32> to vector<16x32xf32>
    %113 = arith.subf %100, %112 : vector<16x32xf32>
    %cst_36 = arith.constant 9.99999996E-13 : f32
    %114 = vector.broadcast %cst_36 : f32 to vector<16x1xf32>
    %115 = arith.addf %111, %114 : vector<16x1xf32>
    %116 = math.rsqrt %115 : vector<16x1xf32>
    %117 = vector.broadcast %116 : vector<16x1xf32> to vector<16x32xf32>
    %118 = arith.mulf %113, %117 : vector<16x32xf32>
    %119 = vector.broadcast %4 : vector<1x32xf32> to vector<16x32xf32>
    %120 = arith.mulf %118, %119 : vector<16x32xf32>
    %121 = vector.broadcast %5 : vector<1x32xf32> to vector<16x32xf32>
    %122 = arith.addf %120, %121 : vector<16x32xf32>
    %c0_37 = arith.constant 0 : index
    %c0_38 = arith.constant 0 : index
    %123 = vector.load %arg5[%c0_37, %c0_38] : memref<32x64xf32, #tpu.memory_space<vmem>>, vector<32x64xf32>
    %cst_39 = arith.constant dense<0.000000e+00> : vector<16x64xf32>
    %124 = tpu.matmul %122, %123, %cst_39 {dimension_numbers = #tpu.dot_dimension_numbers<[1], [0], [0], [1], [0, 0, 1, 1], [], []>} : vector<16x32xf32>, vector<32x64xf32>, vector<16x64xf32> -> vector<16x64xf32>
    %c0_40 = arith.constant 0 : index
    %c0_41 = arith.constant 0 : index
    %125 = vector.load %arg6[%c0_40, %c0_41] : memref<1x64xf32, #tpu.memory_space<vmem>>, vector<1x64xf32>
    %126 = vector.broadcast %125 : vector<1x64xf32> to vector<16x64xf32>
    %127 = arith.addf %124, %126 : vector<16x64xf32>
    %128 = arith.mulf %127, %127 : vector<16x64xf32>
    %129 = arith.mulf %127, %128 : vector<16x64xf32>
    %cst_42 = arith.constant 4.471500e-02 : f32
    %130 = vector.broadcast %cst_42 : f32 to vector<16x64xf32>
    %131 = arith.mulf %130, %129 : vector<16x64xf32>
    %132 = arith.addf %127, %131 : vector<16x64xf32>
    %cst_43 = arith.constant 0.797884583 : f32
    %133 = vector.broadcast %cst_43 : f32 to vector<16x64xf32>
    %134 = arith.mulf %133, %132 : vector<16x64xf32>
    %135 = math.tanh %134 : vector<16x64xf32>
    %cst_44 = arith.constant 1.000000e+00 : f32
    %136 = vector.broadcast %cst_44 : f32 to vector<16x64xf32>
    %137 = arith.addf %136, %135 : vector<16x64xf32>
    %cst_45 = arith.constant 5.000000e-01 : f32
    %138 = vector.broadcast %cst_45 : f32 to vector<16x64xf32>
    %139 = arith.mulf %138, %137 : vector<16x64xf32>
    %140 = arith.mulf %127, %139 : vector<16x64xf32>
    %c0_46 = arith.constant 0 : index
    %c0_47 = arith.constant 0 : index
    %141 = vector.load %arg7[%c0_46, %c0_47] : memref<64x32xf32, #tpu.memory_space<vmem>>, vector<64x32xf32>
    %cst_48 = arith.constant dense<0.000000e+00> : vector<16x32xf32>
    %142 = tpu.matmul %140, %141, %cst_48 {dimension_numbers = #tpu.dot_dimension_numbers<[1], [0], [0], [1], [0, 0, 1, 1], [], []>} : vector<16x64xf32>, vector<64x32xf32>, vector<16x32xf32> -> vector<16x32xf32>
    %143 = vector.broadcast %6 : vector<1x32xf32> to vector<16x32xf32>
    %144 = arith.addf %142, %143 : vector<16x32xf32>
    %145 = arith.addf %122, %144 : vector<16x32xf32>
    %cst_49 = arith.constant dense<0.000000e+00> : vector<16xf32>
    %146 = vector.multi_reduction <add>, %145, %cst_49 [1] : vector<16x32xf32> to vector<16xf32>
    %147 = vector.shape_cast %146 : vector<16xf32> to vector<16x1xf32>
    %cst_50 = arith.constant 3.200000e+01 : f32
    %148 = vector.broadcast %cst_50 : f32 to vector<16x1xf32>
    %149 = arith.divf %147, %148 : vector<16x1xf32>
    %150 = vector.broadcast %149 : vector<16x1xf32> to vector<16x32xf32>
    %151 = arith.subf %145, %150 : vector<16x32xf32>
    %152 = arith.mulf %151, %151 : vector<16x32xf32>
    %cst_51 = arith.constant dense<0.000000e+00> : vector<16xf32>
    %153 = vector.multi_reduction <add>, %152, %cst_51 [1] : vector<16x32xf32> to vector<16xf32>
    %154 = vector.shape_cast %153 : vector<16xf32> to vector<16x1xf32>
    %cst_52 = arith.constant 3.200000e+01 : f32
    %155 = vector.broadcast %cst_52 : f32 to vector<16x1xf32>
    %156 = arith.divf %154, %155 : vector<16x1xf32>
    %157 = vector.broadcast %149 : vector<16x1xf32> to vector<16x32xf32>
    %158 = arith.subf %145, %157 : vector<16x32xf32>
    %cst_53 = arith.constant 9.99999996E-13 : f32
    %159 = vector.broadcast %cst_53 : f32 to vector<16x1xf32>
    %160 = arith.addf %156, %159 : vector<16x1xf32>
    %161 = math.rsqrt %160 : vector<16x1xf32>
    %162 = vector.broadcast %161 : vector<16x1xf32> to vector<16x32xf32>
    %163 = arith.mulf %158, %162 : vector<16x32xf32>
    %164 = vector.broadcast %7 : vector<1x32xf32> to vector<16x32xf32>
    %165 = arith.mulf %163, %164 : vector<16x32xf32>
    %166 = vector.broadcast %8 : vector<1x32xf32> to vector<16x32xf32>
    %167 = arith.addf %165, %166 : vector<16x32xf32>
    %168 = vector.shape_cast %167 : vector<16x32xf32> to vector<2x8x32xf32>
    %169 = vector.extract_strided_slice %168 {offsets = [0, 0, 0], sizes = [2, 1, 32], strides = [1, 1, 1]} : vector<2x8x32xf32> to vector<2x1x32xf32>
    %170 = vector.shape_cast %169 : vector<2x1x32xf32> to vector<2x32xf32>
    %c0_54 = arith.constant 0 : index
    %c0_55 = arith.constant 0 : index
    %171 = vector.load %arg9[%c0_54, %c0_55] : memref<32x3xf32, #tpu.memory_space<vmem>>, vector<32x3xf32>
    %cst_56 = arith.constant dense<0.000000e+00> : vector<2x3xf32>
    %172 = tpu.matmul %170, %171, %cst_56 {dimension_numbers = #tpu.dot_dimension_numbers<[1], [0], [0], [1], [0, 0, 1, 1], [], []>} : vector<2x32xf32>, vector<32x3xf32>, vector<2x3xf32> -> vector<2x3xf32>
    %c0_57 = arith.constant 0 : index
    %c0_58 = arith.constant 0 : index
    %173 = vector.load %arg10[%c0_57, %c0_58] : memref<1x3xf32, #tpu.memory_space<vmem>>, vector<1x3xf32>
    %174 = vector.broadcast %173 : vector<1x3xf32> to vector<2x3xf32>
    %175 = arith.addf %172, %174 : vector<2x3xf32>
    %c0_59 = arith.constant 0 : index
    %c0_60 = arith.constant 0 : index
    %176 = vector.load %arg11[%c0_59, %c0_60] : memref<2x3xf32, #tpu.memory_space<vmem>>, vector<2x3xf32>
    tpu.vector_store %arg11[%c0_59, %c0_60], %175 {strides = array<i32>} : memref<2x3xf32, #tpu.memory_space<vmem>>, vector<2x3xf32>,
    return
  }
}

</mosaic_0001>

<bundles_post_ra>
// kernel: bias_classifier_forward.1
= control target key start
LH: loop header
LB: loop body
LE: loop exit
PB: predicated region body
PF: predicated region fallthrough
CT: control target
= control target key end

     0   :  { %vm42_vm0 = vcmask 261120   ;;  %s1080_s0 = inlined_call_operand.vmem [shape: f32[2,8,32], index: 0, kind: input, shape index: {}]   ;;  %s1081_s1 = inlined_call_operand.vmem [shape: f32[2,8], index: 1, kind: input, shape index: {}]   ;;  %s1082_s2 = inlined_call_operand.vmem [shape: f32[32,96], index: 2, kind: input, shape index: {}]   ;;  %s1083_s3 = inlined_call_operand.vmem [shape: f32[1,96], index: 3, kind: input, shape index: {}]   ;;  %s1084_s4 = inlined_call_operand.vmem [shape: f32[32,32], index: 4, kind: input, shape index: {}]   ;;  %s1085_s5 = inlined_call_operand.vmem [shape: f32[32,64], index: 5, kind: input, shape index: {}]   ;;  %s1086_s6 = inlined_call_operand.vmem [shape: f32[1,64], index: 6, kind: input, shape index: {}]   ;;  %s1087_s7 = inlined_call_operand.vmem [shape: f32[64,32], index: 7, kind: input, shape index: {}]   ;;  %s1088_s8 = inlined_call_operand.vmem [shape: f32[8,32], index: 8, kind: input, shape index: {}]   ;;  %s1089_s9 = inlined_call_operand.vmem [shape: f32[32,3], index: 9, kind: input, shape index: {}]   ;;  %s1090_s10 = inlined_call_operand.vmem [shape: f32[1,3], index: 10, kind: input, shape index: {}]   ;;  %s1091_s11 = inlined_call_operand.hbm [shape: f32[2,3], index: 11, kind: output, shape index: {}]  }
   0x1   :  { %v40_v0 = vld [vmem:[%s1080_s0] sm:$0xff] }
   0x2   :  { %v43_v1 = vsel %vm42_vm0, %v40_v0, 0.0 }
   0x3   :  { %44 = vadd.xlane.f32.xlu0 %v43_v1 }
   0x4   :  { %16 = vsyncpa [#allocation3], 0  ;;  %v41_v2 = vld [vmem:[%s1080_s0 + $0x8] sm:$0xff]  ;;  %v828_v4 = vmov 32.0   ;;  %v103_v21 = vld [vmem:[%s1082_s2 + $0x18] sm:$0xff]  ;;  %s829_s30 = smov 112  }
   0x5   :  { %v46_v3 = vsel %vm42_vm0, %v41_v2, 0.0  ;;  %768 = vrcp.f32 %v828_v4  ;;  %126 = vmatpush.msra.mxu0 %v103_v21  ;;  %v102_v22 = vld [vmem:[%s1082_s2 + $0x10] sm:$0xff]  ;;  %v101_v23 = vld [vmem:[%s1082_s2 + $0x8] sm:$0xff]  ;;  %v100_v24 = vld [vmem:[%s1082_s2] sm:$0xff]  ;;  %s830_s12 = smov 80   ;;  %s831_s13 = smov 96  }
   0x6   :  { %v926_v36 = vld [vmem:[%s1088_s8] sm:$0xff]  ;;  %vm149_vm8 = vcmask 130048   ;;  %vm209_vm9 = vcmask 64512   ;;  %s833_s15 = smov 48   ;;  %s834_s29 = smov [#allocation2]  }
   0x7   :  { %127 = vmatpush.msra.mxu0 %v102_v22  ;;  %v94_v40 = vperm.slane %v926_v36, 0  ;;  %v97_v44 = vperm.slane %v926_v36, 1  ;;  %v765_v54 = vld [vmem:[%s1083_s3] ss:$0 sm:$0xff] }
   0x8   :  { %v137_v1 = vld [vmem:[%s1081_s1] sm:$0x3]  ;;  %s832_s1 = smov 64  }
   0x9   :  { %128 = vmatpush.msra.mxu0 %v101_v23 }
   0xb   :  { %47 = vadd.xlane.f32.xlu0 %v46_v3  ;;  %v769_v5 = vpop.eup %768  ;;  %129 = vmatpush.msra.mxu0 %v100_v24 }
   0xc   :  { %v50_v6 = vmul.f32 32.0, %v769_v5  ;;  %vm54_vm1 = vweird.f32 %v769_v5 }
   0xe   :  { %v51_v7 = vsub.f32 1.0, %v50_v6 }
  0x10   :  { %v52_v8 = vmul.f32 %v769_v5, %v51_v7 }
  0x12   :  { %v53_v9 = vadd.f32 %v769_v5, %v52_v8 }
  0x14   :  { %v903_v10 = vsel %vm54_vm1, %v769_v5, %v53_v9  ;;  %vm595_vm1 = vcmask 523264  }
  0x76   :  { %v45_v11 = vpop.xlane.xlu0 %44 }
  0x77   :  { %v56_v12 = vmul.f32 %v903_v10, %v45_v11 }
  0x79   :  { %v58_v13 = vsub.f32 %v40_v0, %v56_v12 }
  0x7b   :  { %v60_v14 = vmul.f32 %v58_v13, %v58_v13 }
  0x7d   :  { %v62_v15 = vsel %vm42_vm0, %v60_v14, 0.0 }
  0x7e   :  { %63 = vadd.xlane.f32.xlu1 %v62_v15  ;;  %v48_v16 = vpop.xlane.xlu0 %47 }
  0x7f   :  { %v57_v17 = vmul.f32 %v903_v10, %v48_v16 }
  0x81   :  { %v59_v18 = vsub.f32 %v41_v2, %v57_v17  ;;  %v138_v2 = vsub.f32 1.0, %v137_v1 }
  0x83   :  { %v61_v19 = vmul.f32 %v59_v18, %v59_v18  ;;  %v139_v3 = vmul.f32 -1e+09, %v138_v2  ;;  %v142_v2 = vld [vmem:[%s1084_s4] sm:$0xff] }
  0x85   :  { %v65_v20 = vsel %vm42_vm0, %v61_v19, 0.0  ;;  %v203_v4 = vperm.slane %v139_v3, 0  ;;  %v141_v9 = vrot.slane %v139_v3, 1  ;;  %v145_v3 = vld [vmem:[%s1084_s4 + $0x18] sm:$0xff] }
  0x86   :  { %66 = vadd.xlane.f32.xlu1 %v65_v20 }
  0x87   :  { %v204_v11 = vperm.slane %v141_v9, 0  ;;  %v476_v9 = vperm.slane %v926_v36, 2 }
  0xf1   :  { %v64_v25 = vpop.xlane.xlu1 %63 }
  0xf2   :  { %v68_v26 = vmul.f32 %v64_v25, %v903_v10 }
  0xf4   :  { %v70_v27 = vadd.f32 1e-12, %v68_v26 }
  0xf6   :  { %770 = vrsqrt.f32 %v70_v27  ;;  %vm78_vm3 = vweird.f32 %v70_v27 }
  0xf9   :  { %v67_v28 = vpop.xlane.xlu1 %66 }
  0xfa   :  { %v69_v29 = vmul.f32 %v67_v28, %v903_v10 }
  0xfc   :  { %v771_v30 = vpop.eup %770  ;;  %v71_v31 = vadd.f32 1e-12, %v69_v29 }
  0xfd   :  { %v73_v32 = vmul.f32 %v771_v30, %v70_v27  ;;  %vm79_vm2 = vweird.f32 %v771_v30 }
  0xfe   :  { %772 = vrsqrt.f32 %v71_v31  ;;  %vm80_vm4 = vmor %vm78_vm3, %vm79_vm2  ;;  %vm88_vm6 = vweird.f32 %v71_v31 }
  0xff   :  { %v74_v33 = vmul.f32 %v771_v30, %v73_v32 }
 0x101   :  { %v75_v34 = vmul.f32 0.5, %v74_v33 }
 0x103   :  { %v76_v35 = vsub.f32 1.5, %v75_v34 }
 0x104   :  { %v773_v37 = vpop.eup %772 }
 0x105   :  { %v77_v38 = vmul.f32 %v771_v30, %v76_v35  ;;  %v83_v39 = vmul.f32 %v773_v37, %v71_v31  ;;  %vm89_vm5 = vweird.f32 %v773_v37 }
 0x106   :  { %vm90_vm7 = vmor %vm88_vm6, %vm89_vm5 }
 0x107   :  { %v81_v41 = vsel %vm80_vm4, %v771_v30, %v77_v38  ;;  %v84_v42 = vmul.f32 %v773_v37, %v83_v39 }
 0x108   :  { %v92_v43 = vmul.f32 %v81_v41, %v58_v13 }
 0x109   :  { %v85_v45 = vmul.f32 0.5, %v84_v42 }
 0x10a   :  { %v95_v46 = vmul.f32 %v94_v40, %v92_v43 }
 0x10b   :  { %v86_v47 = vsub.f32 1.5, %v85_v45 }
 0x10c   :  { %v930_v48 = vadd.f32 %v97_v44, %v95_v46 }
 0x10d   :  { %v87_v49 = vmul.f32 %v773_v37, %v86_v47 }
 0x10e   :  { %730 = vmatmul.msk.f32.vlgmr.msra.gmra.mxu0 %vm42_vm0, %v930_v48 }
 0x10f   :  { %v91_v50 = vsel %vm90_vm7, %v773_v37, %v87_v49 }
 0x110   :  { %v93_v51 = vmul.f32 %v91_v50, %v59_v18 }
 0x112   :  { %v96_v52 = vmul.f32 %v94_v40, %v93_v51 }
 0x114   :  { %v934_v53 = vadd.f32 %v97_v44, %v96_v52 }
 0x116   :  { %731 = vmatmul.msk.f32.gmra.mxu0 %vm42_vm0, %v934_v53 }
 0x18b   :  { %v131_v55 = vpop.f32.mrf.mxu0 }
 0x18c   :  { %v941_v56 = vadd.f32 %v765_v54, %v131_v55  ;;  %v143_v55 = vld [vmem:[%s1084_s4 + $0x8] sm:$0xff] }
 0x18e   :  { %284 = vrot.lane.b32.xlu1 %v941_v56, %s829_s30  ;;  %286 = vrot.lane.b32.xlu0 %v941_v56, %s830_s12 }
 0x18f   :  { %147 = vrot.lane.b32.xlu2 %v941_v56, %s831_s13 }
 0x193   :  { %v134_v57 = vpop.f32.mrf.mxu0 }
 0x194   :  { %v946_v58 = vadd.f32 %v765_v54, %v134_v57 }
 0x196   :  { %v760_v24 = vpack.i.bf16 %v946_v58, %v941_v56 }
 0x197   :  { %175 = vrot.lane.b32.xlu2 %v946_v58, %s831_s13 }
 0x19f   :  { %314 = vrot.lane.b32.xlu2 %v946_v58, %s830_s12 }
 0x1a7   :  { %312 = vrot.lane.b32.xlu2 %v946_v58, %s829_s30  ;;  %s721_s30 = sshll.u32 %s1091_s11, 4  ;;  %s722_s30 = int_to_ptr.hbm [resolvable:$true] %s721_s30 }
 0x1e9   :  { %v148_v59 = vpop.permute.xlu2 %147 }
 0x1ea   :  { %732 = vmatpush.xpose.msk.msrb.mxu0 %vm149_vm8, %v148_v59 }
 0x1ed   :  { %733 = vmatmul.msk.f32.vlgmr.msrb.gmra.mxu0 %vm149_vm8, %v941_v56 }
 0x1ee   :  { %467 = vmatpush.msra.mxu0 %v143_v55 }
 0x1f0   :  { %468 = vmatpush.msra.mxu0 %v142_v2  ;;  %v593_v2 = vld [vmem:[%s1087_s7 + $0x38] sm:$0xff] }
 0x1f1   :  { %v176_v60 = vpop.permute.xlu2 %175 }
 0x1f2   :  { %734 = vmatpush.xpose.msk.msra.mxu2 %vm149_vm8, %v176_v60 }
 0x1f5   :  { %735 = vmatmul.msk.f32.vlgmr.msra.gmra.mxu2 %vm149_vm8, %v946_v58 }
 0x1f9   :  { %v315_v61 = vpop.permute.xlu2 %314 }
 0x1fa   :  { %740 = vmatpush.xpose.msk.msrb.mxu2 %vm149_vm8, %v315_v61 }
 0x1fe   :  { %438 = vmatpush.msra.mxu2 %v145_v3  ;;  %v592_v3 = vld [vmem:[%s1087_s7 + $0x30] sm:$0xff] }
 0x200   :  { %v287_v62 = vpop.permute.xlu0 %286  ;;  %v285_v0 = vpop.permute.xlu1 %284 }
 0x201   :  { %v313_v63 = vpop.permute.xlu2 %312  ;;  %738 = vmatpush.xpose.msk.msra.mxu1 %vm149_vm8, %v287_v62 }
 0x202   :  { %741 = vmatmul.msk.f32.vlgmr.msrb.gmra.mxu2 %vm149_vm8, %v313_v63 }
 0x204   :  { %739 = vmatmul.msk.f32.vlgmr.msra.gmra.mxu1 %vm149_vm8, %v285_v0 }
 0x26a   :  { %v171_v5 = vpop.f32.mrf.mxu0 }
 0x26b   :  { %v201_v6 = vmul.f32 0.25, %v171_v5 }
 0x26d   :  { %v207_v7 = vadd.f32 %v203_v4, %v201_v6 }
 0x26f   :  { %v210_v8 = vsel %vm209_vm9, %v207_v7, -inf }
 0x270   :  { %211 = vmax.xlane.f32.xlu2 %v210_v8 }
 0x278   :  { %v198_v12 = vpop.f32.mrf.mxu2 }
 0x279   :  { %v202_v13 = vmul.f32 0.25, %v198_v12 }
 0x27b   :  { %v208_v14 = vadd.f32 %v204_v11, %v202_v13 }
 0x27d   :  { %v213_v15 = vsel %vm209_vm9, %v208_v14, -inf }
 0x27e   :  { %214 = vmax.xlane.f32.xlu0 %v213_v15 }
 0x281   :  { %v309_v16 = vpop.f32.mrf.mxu1 }
 0x282   :  { %v340_v17 = vmul.f32 0.25, %v309_v16 }
 0x284   :  { %v342_v18 = vadd.f32 %v340_v17, %v203_v4  ;;  %v144_v4 = vld [vmem:[%s1084_s4 + $0x10] sm:$0xff] }
 0x285   :  { %v337_v19 = vpop.f32.mrf.mxu2  ;;  %439 = vmatpush.msra.mxu2 %v144_v4  ;;  %v591_v4 = vld [vmem:[%s1087_s7 + $0x28] sm:$0xff] }
 0x286   :  { %v341_v20 = vmul.f32 0.25, %v337_v19  ;;  %v344_v21 = vsel %vm209_vm9, %v342_v18, -inf }
 0x287   :  { %345 = vmax.xlane.f32.xlu1 %v344_v21 }
 0x288   :  { %v343_v22 = vadd.f32 %v341_v20, %v204_v11 }
 0x28a   :  { %v347_v23 = vsel %vm209_vm9, %v343_v22, -inf }
 0x28b   :  { %348 = vmax.xlane.f32.xlu2 %v347_v23 }
 0x2a0   :  { %761 = vrot.lane.b32.xlu1 %v760_v24, %s832_s1 }
 0x2e3   :  { %v212_v25 = vpop.xlane.xlu2 %211 }
 0x2e4   :  { %v216_v26 = vsub.f32 %v207_v7, %v212_v25 }
 0x2e6   :  { %v218_v27 = vmul.f32 1.442695, %v216_v26 }
 0x2e8   :  { %774 = vpow2.f32 %v218_v27 }
 0x2ee   :  { %v775_v28 = vpop.eup %774 }
 0x2ef   :  { %v222_v29 = vsel %vm209_vm9, %v775_v28, 0.0 }
 0x2f0   :  { %223 = vadd.xlane.f32.xlu0 %v222_v29 }
 0x2f1   :  { %v215_v30 = vpop.xlane.xlu0 %214 }
 0x2f2   :  { %v217_v31 = vsub.f32 %v208_v14, %v215_v30 }
 0x2f4   :  { %v220_v32 = vmul.f32 1.442695, %v217_v31 }
 0x2f6   :  { %776 = vpow2.f32 %v220_v32  ;;  %v533_v32 = vld [vmem:[%s1085_s5 + $0x10] sm:$0xff] }
 0x2fa   :  { %v346_v33 = vpop.xlane.xlu1 %345 }
 0x2fb   :  { %v350_v34 = vsub.f32 %v342_v18, %v346_v33  ;;  %v532_v33 = vld [vmem:[%s1085_s5 + $0x8] sm:$0xff] }
 0x2fc   :  { %v777_v35 = vpop.eup %776 }
 0x2fd   :  { %v352_v37 = vmul.f32 1.442695, %v350_v34  ;;  %v225_v38 = vsel %vm209_vm9, %v777_v35, 0.0  ;;  %v531_v34 = vld [vmem:[%s1085_s5] sm:$0xff] }
 0x2fe   :  { %226 = vadd.xlane.f32.xlu2 %v225_v38  ;;  %v349_v39 = vpop.xlane.xlu2 %348 }
 0x2ff   :  { %778 = vpow2.f32 %v352_v37  ;;  %v351_v40 = vsub.f32 %v343_v22, %v349_v39 }
 0x301   :  { %v354_v41 = vmul.f32 1.442695, %v351_v40 }
 0x303   :  { %780 = vpow2.f32 %v354_v41 }
 0x305   :  { %v779_v42 = vpop.eup %778 }
 0x306   :  { %v356_v43 = vsel %vm209_vm9, %v779_v42, 0.0 }
 0x307   :  { %357 = vadd.xlane.f32.xlu0 %v356_v43 }
 0x309   :  { %v781_v44 = vpop.eup %780 }
 0x30a   :  { %v359_v45 = vsel %vm209_vm9, %v781_v44, 0.0 }
 0x30f   :  { %360 = vadd.xlane.f32.xlu0 %v359_v45 }
 0x312   :  { %v762_v46 = vpop.permute.xlu1 %761 }
 0x313   :  { %v763_v47 = vunpack.i.l.bf16 %v762_v46  ;;  %v764_v49 = vunpack.i.h.bf16 %v762_v46 }
 0x315   :  { %253 = vmatpush.msra.mxu3 %v763_v47 }
 0x316   :  { %366 = vrot.lane.b32.xlu2 %v941_v56, %s833_s15 }
 0x317   :  { %279 = vmatpush.msrb.mxu3 %v764_v49  ;;  %v525_v49 = vperm.slane %v926_v36, 3 }
 0x323   :  { %392 = vrot.lane.b32.xlu0 %v946_v58, %s833_s15 }
 0x363   :  { %v224_v50 = vpop.xlane.xlu0 %223 }
 0x364   :  { %782 = vrcp.f32 %v224_v50 }
 0x36a   :  { %v783_v51 = vpop.eup %782 }
 0x36b   :  { %v230_v52 = vmul.f32 %v783_v51, %v775_v28 }
 0x36d   :  { %736 = vmatmul.msk.f32.vlgmr.msra.gmra.mxu3 %vm209_vm9, %v230_v52  ;;  %v528_v52 = vperm.slane %v926_v36, 4 }
 0x371   :  { %v227_v54 = vpop.xlane.xlu2 %226 }
 0x372   :  { %784 = vrcp.f32 %v227_v54 }
 0x378   :  { %v785_v57 = vpop.eup %784 }
 0x379   :  { %v367_v59 = vpop.permute.xlu2 %366  ;;  %v231_v60 = vmul.f32 %v785_v57, %v777_v35 }
 0x37a   :  { %387 = vmatpush.msra.mxu3 %v367_v59  ;;  %v358_v56 = vpop.xlane.xlu0 %357 }
 0x37b   :  { %786 = vrcp.f32 %v358_v56  ;;  %737 = vmatmul.msk.f32.vlgmr.msrb.gmra.mxu3 %vm209_vm9, %v231_v60 }
 0x381   :  { %v787_v58 = vpop.eup %786 }
 0x382   :  { %v364_v61 = vmul.f32 %v787_v58, %v779_v42  ;;  %v361_v62 = vpop.xlane.xlu0 %360 }
 0x383   :  { %788 = vrcp.f32 %v361_v62 }
 0x384   :  { %742 = vmatmul.msk.f32.vlgmr.msra.gmra.mxu3 %vm209_vm9, %v364_v61 }
 0x389   :  { %v789_v63 = vpop.eup %788 }
 0x38a   :  { %v365_v1 = vmul.f32 %v789_v63, %v781_v44 }
 0x395   :  { %v393_v0 = vpop.permute.xlu0 %392 }
 0x396   :  { %413 = vmatpush.msrb.mxu1 %v393_v0 }
 0x397   :  { %743 = vmatmul.msk.f32.vlgmr.msrb.gmra.mxu1 %vm209_vm9, %v365_v1  ;;  %vm712_vm9 = vcmask 17408  }
 0x398   :  { %610 = vmatpush.msra.mxu1 %v593_v2 }
 0x39a   :  { %611 = vmatpush.msra.mxu1 %v592_v3 }
 0x39c   :  { %612 = vmatpush.msra.mxu1 %v591_v4 }
 0x3f0   :  { %v255_v5 = vpop.f32.mrf.mxu3 }
 0x3f1   :  { %746 = vmatmul.msk.f32.vlgmr.msra.gmra.mxu0 %vm149_vm8, %v255_v5  ;;  %v590_v5 = vld [vmem:[%s1087_s7 + $0x20] sm:$0xff] }
 0x3f2   :  { %613 = vmatpush.msra.mxu1 %v590_v5 }
 0x3fe   :  { %v281_v6 = vpop.f32.mrf.mxu3 }
 0x3ff   :  { %747 = vmatmul.msk.f32.gmra.mxu0 %vm149_vm8, %v281_v6  ;;  %v589_v6 = vld [vmem:[%s1087_s7 + $0x18] sm:$0xff] }
 0x400   :  { %614 = vmatpush.msra.mxu1 %v589_v6 }
 0x407   :  { %v389_v7 = vpop.f32.mrf.mxu3 }
 0x408   :  { %744 = vmatmul.msk.f32.vlgmr.msra.gmra.mxu2 %vm149_vm8, %v389_v7  ;;  %v588_v7 = vld [vmem:[%s1087_s7 + $0x10] sm:$0xff] }
 0x409   :  { %615 = vmatpush.msra.mxu1 %v588_v7 }
 0x414   :  { %v415_v8 = vpop.f32.mrf.mxu1 }
 0x415   :  { %745 = vmatmul.msk.f32.gmra.mxu2 %vm149_vm8, %v415_v8  ;;  %v587_v8 = vld [vmem:[%s1087_s7 + $0x8] sm:$0xff]  ;;  %vm688_vm8 = vcmask 1041409  }
 0x416   :  { %616 = vmatpush.msra.mxu1 %v587_v8 }
 0x46e   :  { %v470_v11 = vpop.f32.mrf.mxu0 }
 0x47c   :  { %v473_v17 = vpop.f32.mrf.mxu0 }
 0x48b   :  { %v441_v12 = vpop.f32.mrf.mxu2 }
 0x48c   :  { %v471_v13 = vadd.f32 %v470_v11, %v441_v12  ;;  %v766_v11 = vld [vmem:[%s1086_s6] ss:$0 sm:$0xff] }
 0x48e   :  { %v477_v14 = vadd.f32 %v476_v9, %v471_v13 }
 0x490   :  { %v479_v15 = vadd.f32 %v477_v14, %v930_v48 }
 0x492   :  { %v481_v16 = vsel %vm42_vm0, %v479_v15, 0.0 }
 0x493   :  { %482 = vadd.xlane.f32.xlu1 %v481_v16 }
 0x498   :  { %v444_v18 = vpop.f32.mrf.mxu2 }
 0x499   :  { %v474_v19 = vadd.f32 %v473_v17, %v444_v18 }
 0x49b   :  { %v478_v20 = vadd.f32 %v476_v9, %v474_v19  ;;  %v586_v9 = vld [vmem:[%s1087_s7] sm:$0xff] }
 0x49c   :  { %617 = vmatpush.msra.mxu1 %v586_v9 }
 0x49d   :  { %v480_v21 = vadd.f32 %v478_v20, %v934_v53  ;;  %v534_v53 = vld [vmem:[%s1085_s5 + $0x18] sm:$0xff]  ;;  %s719_s5 = sshll.u32 %s834_s29, 4  ;;  %s720_s5 = int_to_ptr.vmem [resolvable:$true] %s719_s5 }
 0x49e   :  { %557 = vmatpush.msrb.mxu3 %v534_v53 }
 0x49f   :  { %v484_v22 = vsel %vm42_vm0, %v480_v21, 0.0 }
 0x4a0   :  { %485 = vadd.xlane.f32.xlu2 %v484_v22  ;;  %558 = vmatpush.msrb.mxu3 %v533_v32  ;;  %v594_v32 = vperm.slane %v926_v36, 5 }
 0x4a2   :  { %559 = vmatpush.msrb.mxu3 %v532_v33 }
 0x4a4   :  { %560 = vmatpush.msrb.mxu3 %v531_v34 }
 0x506   :  { %v483_v23 = vpop.xlane.xlu1 %482 }
 0x507   :  { %v487_v24 = vmul.f32 %v483_v23, %v903_v10 }
 0x509   :  { %v489_v25 = vsub.f32 %v479_v15, %v487_v24 }
 0x50b   :  { %v491_v26 = vmul.f32 %v489_v25, %v489_v25 }
 0x50d   :  { %v493_v27 = vsel %vm42_vm0, %v491_v26, 0.0 }
 0x50e   :  { %494 = vadd.xlane.f32.xlu0 %v493_v27 }
 0x513   :  { %v486_v48 = vpop.xlane.xlu2 %485 }
 0x514   :  { %v488_v28 = vmul.f32 %v486_v48, %v903_v10 }
 0x516   :  { %v490_v29 = vsub.f32 %v480_v21, %v488_v28 }
 0x518   :  { %v492_v30 = vmul.f32 %v490_v29, %v490_v29 }
 0x51a   :  { %v496_v31 = vsel %vm42_vm0, %v492_v30, 0.0 }
 0x51b   :  { %497 = vadd.xlane.f32.xlu1 %v496_v31 }
 0x581   :  { %v495_v35 = vpop.xlane.xlu0 %494 }
 0x582   :  { %v499_v37 = vmul.f32 %v495_v35, %v903_v10 }
 0x584   :  { %v501_v38 = vadd.f32 1e-12, %v499_v37 }
 0x586   :  { %790 = vrsqrt.f32 %v501_v38  ;;  %vm509_vm11 = vweird.f32 %v501_v38 }
 0x58c   :  { %v791_v39 = vpop.eup %790 }
 0x58d   :  { %v504_v40 = vmul.f32 %v791_v39, %v501_v38  ;;  %vm510_vm10 = vweird.f32 %v791_v39 }
 0x58e   :  { %v498_v41 = vpop.xlane.xlu1 %497  ;;  %vm511_vm12 = vmor %vm509_vm11, %vm510_vm10 }
 0x58f   :  { %v505_v42 = vmul.f32 %v791_v39, %v504_v40  ;;  %v500_v43 = vmul.f32 %v498_v41, %v903_v10 }
 0x591   :  { %v506_v44 = vmul.f32 0.5, %v505_v42  ;;  %v502_v45 = vadd.f32 1e-12, %v500_v43 }
 0x593   :  { %v507_v46 = vsub.f32 1.5, %v506_v44  ;;  %792 = vrsqrt.f32 %v502_v45  ;;  %vm519_vm14 = vweird.f32 %v502_v45 }
 0x595   :  { %v508_v47 = vmul.f32 %v791_v39, %v507_v46 }
 0x597   :  { %v512_v50 = vsel %vm511_vm12, %v791_v39, %v508_v47 }
 0x598   :  { %v523_v51 = vmul.f32 %v512_v50, %v489_v25 }
 0x599   :  { %v793_v54 = vpop.eup %792 }
 0x59a   :  { %v526_v55 = vmul.f32 %v525_v49, %v523_v51  ;;  %v514_v57 = vmul.f32 %v793_v54, %v502_v45  ;;  %vm520_vm13 = vweird.f32 %v793_v54 }
 0x59b   :  { %vm521_vm15 = vmor %vm519_vm14, %vm520_vm13 }
 0x59c   :  { %v515_v59 = vmul.f32 %v793_v54, %v514_v57  ;;  %v529_v60 = vadd.f32 %v528_v52, %v526_v55 }
 0x59e   :  { %v516_v56 = vmul.f32 0.5, %v515_v59  ;;  %748 = vmatmul.msk.f32.vlgmr.msrb.gmra.mxu3 %vm42_vm0, %v529_v60  ;;  %v680_v59 = vld [vmem:[%s1089_s9 + $0x18] sm:$0xff] }
 0x59f   :  { %704 = vmatpush.msrb.mxu2 %v680_v59 }
 0x5a0   :  { %v517_v58 = vsub.f32 1.5, %v516_v56  ;;  %v678_v56 = vld [vmem:[%s1089_s9 + $0x8] sm:$0xff] }
 0x5a2   :  { %v518_v61 = vmul.f32 %v793_v54, %v517_v58  ;;  %v677_v58 = vld [vmem:[%s1089_s9] sm:$0xff] }
 0x5a4   :  { %v522_v62 = vsel %vm521_vm15, %v793_v54, %v518_v61 }
 0x5a5   :  { %v524_v63 = vmul.f32 %v522_v62, %v490_v29 }
 0x5a7   :  { %v527_v0 = vmul.f32 %v525_v49, %v524_v63 }
 0x5a9   :  { %v530_v1 = vadd.f32 %v528_v52, %v527_v0 }
 0x5ab   :  { %749 = vmatmul.msk.f32.gmra.mxu3 %vm42_vm0, %v530_v1 }
 0x621   :  { %v562_v12 = vpop.f32.mrf.mxu3 }
 0x622   :  { %v563_v13 = vadd.f32 %v766_v11, %v562_v12 }
 0x624   :  { %v568_v14 = vmul.f32 %v563_v13, %v563_v13 }
 0x626   :  { %v570_v15 = vmul.f32 %v568_v14, %v563_v13 }
 0x628   :  { %v572_v16 = vmul.f32 0.044715, %v570_v15 }
 0x62a   :  { %v574_v17 = vadd.f32 %v572_v16, %v563_v13 }
 0x62c   :  { %v576_v18 = vmul.f32 0.7978846, %v574_v17 }
 0x62e   :  { %794 = vtanh.f32 %v576_v18  ;;  %v565_v19 = vpop.f32.mrf.mxu3 }
 0x62f   :  { %v566_v20 = vadd.f32 %v766_v11, %v565_v19  ;;  %v674_v19 = vperm.slane %v926_v36, 7 }
 0x631   :  { %v569_v21 = vmul.f32 %v566_v20, %v566_v20 }
 0x633   :  { %v571_v22 = vmul.f32 %v569_v21, %v566_v20 }
 0x634   :  { %v795_v23 = vpop.eup %794 }
 0x635   :  { %v580_v24 = vadd.f32 1.0, %v795_v23  ;;  %v573_v25 = vmul.f32 0.044715, %v571_v22 }
 0x637   :  { %v582_v26 = vmul.f32 0.5, %v580_v24  ;;  %v575_v27 = vadd.f32 %v573_v25, %v566_v20  ;;  %v767_v24 = vld [vmem:[%s1090_s10] ss:$0 sm:$0xff] }
 0x639   :  { %v584_v48 = vmul.f32 %v582_v26, %v563_v13  ;;  %v577_v28 = vmul.f32 0.7978846, %v575_v27 }
 0x63b   :  { %750 = vmatmul.msk.f32.vlgmr.msra.gmra.mxu1 %vm595_vm1, %v584_v48  ;;  %796 = vtanh.f32 %v577_v28 }
 0x641   :  { %v797_v29 = vpop.eup %796 }
 0x642   :  { %v581_v30 = vadd.f32 1.0, %v797_v29 }
 0x644   :  { %v583_v31 = vmul.f32 0.5, %v581_v30 }
 0x646   :  { %v585_v53 = vmul.f32 %v583_v31, %v566_v20 }
 0x648   :  { %751 = vmatmul.msk.f32.gmra.mxu1 %vm595_vm1, %v585_v53 }
 0x6b8   :  { %v619_v33 = vpop.f32.mrf.mxu1 }
 0x6b9   :  { %v620_v34 = vadd.f32 %v619_v33, %v594_v32 }
 0x6bb   :  { %v625_v35 = vadd.f32 %v620_v34, %v529_v60  ;;  %v679_v60 = vld [vmem:[%s1089_s9 + $0x10] sm:$0xff] }
 0x6bc   :  { %705 = vmatpush.msrb.mxu2 %v679_v60 }
 0x6bd   :  { %v627_v37 = vsel %vm42_vm0, %v625_v35, 0.0 }
 0x6be   :  { %628 = vadd.xlane.f32.xlu1 %v627_v37  ;;  %706 = vmatpush.msrb.mxu2 %v678_v56 }
 0x6c0   :  { %707 = vmatpush.msrb.mxu2 %v677_v58 }
 0x6c5   :  { %v622_v38 = vpop.f32.mrf.mxu1 }
 0x6c6   :  { %v623_v39 = vadd.f32 %v622_v38, %v594_v32 }
 0x6c8   :  { %v626_v40 = vadd.f32 %v623_v39, %v530_v1 }
 0x6ca   :  { %v630_v41 = vsel %vm42_vm0, %v626_v40, 0.0 }
 0x6cb   :  { %631 = vadd.xlane.f32.xlu2 %v630_v41 }
 0x731   :  { %v629_v42 = vpop.xlane.xlu1 %628 }
 0x732   :  { %v633_v43 = vmul.f32 %v629_v42, %v903_v10 }
 0x734   :  { %v635_v44 = vsub.f32 %v625_v35, %v633_v43 }
 0x736   :  { %v637_v45 = vmul.f32 %v635_v44, %v635_v44 }
 0x738   :  { %v639_v46 = vsel %vm42_vm0, %v637_v45, 0.0 }
 0x739   :  { %640 = vadd.xlane.f32.xlu0 %v639_v46 }
 0x73e   :  { %v632_v47 = vpop.xlane.xlu2 %631 }
 0x73f   :  { %v634_v49 = vmul.f32 %v632_v47, %v903_v10 }
 0x741   :  { %v636_v50 = vsub.f32 %v626_v40, %v634_v49 }
 0x743   :  { %v638_v51 = vmul.f32 %v636_v50, %v636_v50 }
 0x745   :  { %v642_v52 = vsel %vm42_vm0, %v638_v51, 0.0 }
 0x746   :  { %643 = vadd.xlane.f32.xlu2 %v642_v52 }
 0x7ac   :  { %v641_v54 = vpop.xlane.xlu0 %640 }
 0x7ad   :  { %v645_v55 = vmul.f32 %v641_v54, %v903_v10 }
 0x7af   :  { %v647_v57 = vadd.f32 1e-12, %v645_v55 }
 0x7b1   :  { %798 = vrsqrt.f32 %v647_v57  ;;  %vm655_vm3 = vweird.f32 %v647_v57 }
 0x7b7   :  { %v799_v61 = vpop.eup %798 }
 0x7b8   :  { %v650_v62 = vmul.f32 %v799_v61, %v647_v57  ;;  %vm656_vm2 = vweird.f32 %v799_v61 }
 0x7b9   :  { %v644_v63 = vpop.xlane.xlu2 %643  ;;  %vm657_vm4 = vmor %vm655_vm3, %vm656_vm2 }
 0x7ba   :  { %v646_v0 = vmul.f32 %v644_v63, %v903_v10  ;;  %v651_v1 = vmul.f32 %v799_v61, %v650_v62  ;;  %v671_v10 = vperm.slane %v926_v36, 6 }
 0x7bc   :  { %v648_v2 = vadd.f32 1e-12, %v646_v0  ;;  %v652_v3 = vmul.f32 0.5, %v651_v1 }
 0x7be   :  { %800 = vrsqrt.f32 %v648_v2  ;;  %v653_v4 = vsub.f32 1.5, %v652_v3  ;;  %vm665_vm6 = vweird.f32 %v648_v2 }
 0x7c0   :  { %v654_v7 = vmul.f32 %v799_v61, %v653_v4 }
 0x7c2   :  { %v658_v11 = vsel %vm657_vm4, %v799_v61, %v654_v7 }
 0x7c3   :  { %v669_v14 = vmul.f32 %v658_v11, %v635_v44 }
 0x7c4   :  { %v801_v5 = vpop.eup %800 }
 0x7c5   :  { %v660_v6 = vmul.f32 %v801_v5, %v648_v2  ;;  %vm666_vm5 = vweird.f32 %v801_v5  ;;  %v672_v17 = vmul.f32 %v671_v10, %v669_v14 }
 0x7c6   :  { %vm667_vm7 = vmor %vm665_vm6, %vm666_vm5 }
 0x7c7   :  { %v661_v8 = vmul.f32 %v801_v5, %v660_v6  ;;  %v675_v21 = vadd.f32 %v674_v19, %v672_v17 }
 0x7c9   :  { %v662_v9 = vmul.f32 0.5, %v661_v8 }
 0x7cb   :  { %v663_v12 = vsub.f32 1.5, %v662_v9 }
 0x7cd   :  { %v664_v13 = vmul.f32 %v801_v5, %v663_v12 }
 0x7cf   :  { %v668_v15 = vsel %vm667_vm7, %v801_v5, %v664_v13 }
 0x7d0   :  { %v670_v16 = vmul.f32 %v668_v15, %v636_v50 }
 0x7d2   :  { %v673_v18 = vmul.f32 %v671_v10, %v670_v16 }
 0x7d4   :  { %v676_v20 = vadd.f32 %v674_v19, %v673_v18 }
 0x7d6   :  { %v687_v22 = vrot.slane %v676_v20, 7 }
 0x7d8   :  { %v689_v23 = vsel %vm688_vm8, %v687_v22, %v675_v21 }
 0x7d9   :  { %752 = vmatmul.msk.f32.vlgmr.msrb.gmra.mxu2 %vm42_vm0, %v689_v23 }
 0x85c   :  { %v709_v25 = vpop.f32.mrf.mxu2 }
 0x85d   :  { %v710_v36 = vadd.f32 %v767_v24, %v709_v25 }
 0x85f   :  { %713 = vst.msk [vmem:[#allocation2] sm:$0x3] %vm712_vm9, %v710_v36 }
 0x860   :  { %724 = dma.vmem_to_hbm [thread:$0]  %s720_s5, 32, %s722_s30, [#allocation3]  }
 0x861   :  { %826 = dma.done.wait [#allocation3], 32  }
 0x862   :  { %827 = vsyncadd [#allocation3], 4294967264 }
 0x863   :  { %729 = vsyncpa [#allocation3], 1 }

</bundles_post_ra>
